<compile_context>
chip_gen: v5e
topology: v5e:2x2
jax: 0.10.0
libtpu: 0.0.40
codegen_flags: <defaults>
</compile_context>

<pallas_src>
import math

import jax
import jax.numpy as jnp
from jax.experimental import pallas as pl
from jax.experimental.pallas import tpu as pltpu

_HALF_LOG_2PI = 0.5 * math.log(2.0 * math.pi)


def _round_up(x: int, m: int) -> int:
    return (x + m - 1) // m * m


def _actor_kernel(state_ref, action_ref,
                  w1_ref, b1_ref, w2_ref, b2_ref, w3_ref, b3_ref,
                  means_ref, stds_ref, logp_ref):
    # ---- MLP hot path: bf16 MXU matmuls, f32 accumulation, f32 tail ----
    x = state_ref[...]                                                   # bf16
    h1 = jnp.dot(x, w1_ref[...], preferred_element_type=jnp.float32) + b1_ref[...]
    h1 = jnp.maximum(h1, 0.0).astype(jnp.bfloat16)
    h2 = jnp.dot(h1, w2_ref[...], preferred_element_type=jnp.float32) + b2_ref[...]
    h2 = jnp.maximum(h2, 0.0).astype(jnp.bfloat16)

    # ---- fused [mean | log_std] head; chunk(2, dim=1) -> lane-aligned slice ----
    out3 = jnp.dot(h2, w3_ref[...], preferred_element_type=jnp.float32) + b3_ref[...]
    a_pad = means_ref.shape[-1]
    means = out3[:, :a_pad]
    log_stds = out3[:, a_pad:]

    stds = jnp.exp(log_stds)                      # EUP
    means_ref[...] = means
    stds_ref[...] = stds

    # ---- Normal(means, stds).log_prob(action).sum(-1), no vector divide ----
    act = action_ref[...]
    inv_var = jnp.exp(-2.0 * log_stds)            # EUP; == 1 / stds**2
    diff = act - means
    lp = -0.5 * diff * diff * inv_var - log_stds - _HALF_LOG_2PI
    # Padded action lanes contribute exactly 0: wrapper sets their means/action
    # to 0 and their log_std bias to -0.5*log(2*pi), so no in-kernel mask needed.
    # Row-sum + [tb,1] -> [1,tb] transpose fused into one tiny MXU pass so the
    # logp writeback is a lane-dense [1, tb] row (unmasked vst, 4 B/row).
    ones_row = jnp.ones((1, lp.shape[-1]), jnp.float32)
    logp_ref[...] = jax.lax.dot_general(
        ones_row, lp, (((1,), (1,)), ((), ())),
        precision=jax.lax.Precision.HIGHEST,
        preferred_element_type=jnp.float32)


def pad_actor_params(params):
    """One-time padding of raw (w1,b1,w2,b2,w3,b3) to MXU-aligned bf16/f32 slabs.

    Call once (outside the per-step wrapper) so padded weights are cached in HBM
    instead of being re-built on every forward call.
    """
    w1, b1, w2, b2, w3, b3 = params
    f32, bf16 = jnp.float32, jnp.bfloat16
    S, N = w1.shape
    A = w3.shape[1] // 2
    b1 = jnp.reshape(b1, (1, -1))
    b2 = jnp.reshape(b2, (1, -1))
    b3 = jnp.reshape(b3, (1, -1))
    S_pad, N_pad, A_pad = _round_up(S, 128), _round_up(N, 128), _round_up(A, 128)

    w1_p = jnp.zeros((S_pad, N_pad), bf16).at[:S, :N].set(w1.astype(bf16))
    b1_p = jnp.zeros((1, N_pad), f32).at[:, :N].set(b1)
    w2_p = jnp.zeros((N_pad, N_pad), bf16).at[:N, :N].set(w2.astype(bf16))
    b2_p = jnp.zeros((1, N_pad), f32).at[:, :N].set(b2)

    # Fused head: columns [0, A_pad) = mean half, [A_pad, 2*A_pad) = log_std half.
    w3_p = (jnp.zeros((N_pad, 2 * A_pad), bf16)
            .at[:N, :A].set(w3[:, :A].astype(bf16))
            .at[:N, A_pad:A_pad + A].set(w3[:, A:].astype(bf16)))
    # Padded log_std lanes get -0.5*log(2*pi): with padded means/action = 0 the
    # per-lane log-prob term there is exactly 0 (replaces the in-kernel mask).
    b3_p = (jnp.zeros((1, 2 * A_pad), f32)
            .at[:, A_pad + A:].set(-_HALF_LOG_2PI)
            .at[:, :A].set(b3[:, :A])
            .at[:, A_pad:A_pad + A].set(b3[:, A:]))
    return (w1_p, b1_p, w2_p, b2_p, w3_p, b3_p)


def stochastic_actor_forward(state, action, padded_params, *, block_b: int = 512):
    """Returns (means, stds, logp) with shapes [B, A], [B, A], [B]."""
    w1_p, b1_p, w2_p, b2_p, w3_p, b3_p = padded_params
    B, S = state.shape
    A = action.shape[-1]
    S_pad, N_pad = w1_p.shape
    A_pad = w3_p.shape[1] // 2
    f32, bf16 = jnp.float32, jnp.bfloat16

    # Batch tile: large tiles amortize the ~0.35 us/step pipeline overhead.
    # Keep tb a multiple of 128 (lane-dense logp row store) unless the whole
    # batch fits one step, and aim for >= 2 grid steps so the "parallel" batch
    # axis actually shards across both TensorCores on v7x.
    block_b = max(128, (block_b // 128) * 128)
    if B <= 256:
        tb = _round_up(B, 8)                         # single step, tb == B_pad
    else:
        tb = min(block_b, _round_up(pl.cdiv(B, 2), 128))
    B_pad = _round_up(B, tb)
    grid = (B_pad // tb,)

    # Per-call input padding (state streamed as bf16: half the DMA bytes).
    state_p = jnp.zeros((B_pad, S_pad), bf16).at[:B, :S].set(state.astype(bf16))
    action_p = jnp.zeros((B_pad, A_pad), f32).at[:B, :A].set(action)

    row_spec = lambda cols: pl.BlockSpec((tb, cols), lambda i: (i, 0))
    full_spec = lambda shape: pl.BlockSpec(shape, lambda i: (0, 0))
    # Weights use a constant index_map -> fetched once, VMEM-resident across the
    # grid. (pipeline_mode=pl.Buffered(1) would halve their VMEM; only relevant
    # for much larger N, so not applied here.)

    flops = (2 * B_pad * (S_pad * N_pad + N_pad * N_pad + N_pad * 2 * A_pad + A_pad)
             + 10 * B_pad * A_pad)
    bytes_accessed = (state_p.nbytes + action_p.nbytes
                      + w1_p.nbytes + b1_p.nbytes + w2_p.nbytes + b2_p.nbytes
                      + w3_p.nbytes + b3_p.nbytes
                      + 2 * B_pad * A_pad * 4 + B_pad * 4)

    means_p, stds_p, logp_p = pl.pallas_call(
        _actor_kernel,
        out_shape=(
            jax.ShapeDtypeStruct((B_pad, A_pad), f32),
            jax.ShapeDtypeStruct((B_pad, A_pad), f32),
            jax.ShapeDtypeStruct((1, B_pad), f32),
        ),
        grid=grid,
        in_specs=[
            row_spec(S_pad),                    # state (bf16)
            row_spec(A_pad),                    # action
            full_spec((S_pad, N_pad)),          # w1 (resident across grid)
            full_spec((1, N_pad)),              # b1
            full_spec((N_pad, N_pad)),          # w2
            full_spec((1, N_pad)),              # b2
            full_spec((N_pad, 2 * A_pad)),      # w3 (fused mean|log_std head)
            full_spec((1, 2 * A_pad)),          # b3
        ],
        out_specs=(
            row_spec(A_pad),                              # means
            row_spec(A_pad),                              # stds
            pl.BlockSpec((1, tb), lambda i: (0, i)),      # logp (lane-dense row)
        ),
        compiler_params=pltpu.CompilerParams(
            dimension_semantics=("parallel",),   # batch axis -> both TCs on v7x
        ),
        cost_estimate=pl.CostEstimate(
            flops=flops,
            transcendentals=2 * B_pad * A_pad,
            bytes_accessed=bytes_accessed,
        ),
    )(state_p, action_p, w1_p, b1_p, w2_p, b2_p, w3_p, b3_p)

    # ---- unpack to the module's logical shapes (free XLA slicing) ----
    return means_p[:B, :A], stds_p[:B, :A], logp_p[0, :B]


def init_params(key, state_dim, action_dim, N):
    k1, k2, k3 = jax.random.split(key, 3)
    scale1 = 1.0 / jnp.sqrt(state_dim)
    scale2 = 1.0 / jnp.sqrt(N)
    w1 = jax.random.normal(k1, (state_dim, N), jnp.float32) * scale1
    b1 = jnp.zeros((1, N), jnp.float32)
    w2 = jax.random.normal(k2, (N, N), jnp.float32) * scale2
    b2 = jnp.zeros((1, N), jnp.float32)
    w3 = jax.random.normal(k3, (N, 2 * action_dim), jnp.float32) * scale2
    b3 = jnp.zeros((1, 2 * action_dim), jnp.float32)
    return w1, b1, w2, b2, w3, b3


def _reference_forward(state, action, params):
    # Pure-JAX reference using the same bf16 MXU inputs / f32 accumulation.
    w1, b1, w2, b2, w3, b3 = params
    bf = jnp.bfloat16
    h1 = jnp.maximum(
        jnp.dot(state.astype(bf), w1.astype(bf), preferred_element_type=jnp.float32) + b1, 0.0)
    h2 = jnp.maximum(
        jnp.dot(h1.astype(bf), w2.astype(bf), preferred_element_type=jnp.float32) + b2, 0.0)
    out = jnp.dot(h2.astype(bf), w3.astype(bf), preferred_element_type=jnp.float32) + b3
    A = action.shape[-1]
    means, log_stds = out[:, :A], out[:, A:]
    stds = jnp.exp(log_stds)
    lp = -((action - means) ** 2) / (2.0 * stds ** 2) - log_stds - 0.5 * jnp.log(2.0 * jnp.pi)
    return means, stds, lp.sum(-1)


if __name__ == "__main__":
    key = jax.random.PRNGKey(0)
    k_state, k_action, k_params = jax.random.split(key, 3)

    batch = 8
    state_dim = 16
    action_dim = 4
    N = 32

    state = jax.random.normal(k_state, (batch, state_dim), jnp.float32)
    action = jax.random.normal(k_action, (batch, action_dim), jnp.float32)
    params = init_params(k_params, state_dim, action_dim, N)
    padded = pad_actor_params(params)        # one-time weight padding / caching

    fwd = jax.jit(stochastic_actor_forward)
    means, stds, logp = fwd(state, action, padded)
    jax.block_until_ready((means, stds, logp))

    assert means.shape == (batch, action_dim)
    assert stds.shape == (batch, action_dim)
    assert logp.shape == (batch,)

    # sanity check against pure-JAX reference (same bf16 matmul path)
    r_means, r_stds, r_logp = _reference_forward(state, action, params)
    assert jnp.allclose(means, r_means, atol=1e-3, rtol=1e-3)
    assert jnp.allclose(stds, r_stds, atol=1e-3, rtol=1e-3)
    assert jnp.allclose(logp, r_logp, atol=5e-3, rtol=5e-3)

    # TODO(synk): the torch module returns a torch.distributions.Normal object;
    # here the distribution is represented by its (means, stds) parameters.

    print("KERNEL_OK")
</pallas_src>

<mosaic_0001>
module attributes {stable_mosaic.version = 11 : i64} {
  func.func @_actor_kernel(%arg0: i32, %arg1: memref<8x128xbf16, #tpu.memory_space<vmem>>, %arg2: memref<8x128xf32, #tpu.memory_space<vmem>>, %arg3: memref<128x128xbf16, #tpu.memory_space<vmem>>, %arg4: memref<1x128xf32, #tpu.memory_space<vmem>>, %arg5: memref<128x128xbf16, #tpu.memory_space<vmem>>, %arg6: memref<1x128xf32, #tpu.memory_space<vmem>>, %arg7: memref<128x256xbf16, #tpu.memory_space<vmem>>, %arg8: memref<1x256xf32, #tpu.memory_space<vmem>>, %arg9: memref<8x128xf32, #tpu.memory_space<vmem>>, %arg10: memref<8x128xf32, #tpu.memory_space<vmem>>, %arg11: memref<1x8xf32, #tpu.memory_space<vmem>>) attributes {dimension_semantics = [#tpu.dimension_semantics<parallel>], iteration_bounds = array<i64: 1>, scalar_prefetch = 0 : i64, scratch_operands = 0 : i64, tpu.core_type = #tpu.core_type<tc>, window_params = [{transform_indices = @transform_0, window_bounds = array<i64: 8, 128>}, {transform_indices = @transform_1, window_bounds = array<i64: 8, 128>}, {pipeline_mode = #tpu.pipeline_mode<synchronous>, transform_indices = @transform_2, window_bounds = array<i64: 128, 128>}, {pipeline_mode = #tpu.pipeline_mode<synchronous>, transform_indices = @transform_3, window_bounds = array<i64: 1, 128>}, {pipeline_mode = #tpu.pipeline_mode<synchronous>, transform_indices = @transform_4, window_bounds = array<i64: 128, 128>}, {pipeline_mode = #tpu.pipeline_mode<synchronous>, transform_indices = @transform_5, window_bounds = array<i64: 1, 128>}, {pipeline_mode = #tpu.pipeline_mode<synchronous>, transform_indices = @transform_6, window_bounds = array<i64: 128, 256>}, {pipeline_mode = #tpu.pipeline_mode<synchronous>, transform_indices = @transform_7, window_bounds = array<i64: 1, 256>}, {transform_indices = @transform_8, window_bounds = array<i64: 8, 128>}, {transform_indices = @transform_9, window_bounds = array<i64: 8, 128>}, {transform_indices = @transform_10, window_bounds = array<i64: 1, 8>}]} {
    %c0 = arith.constant 0 : index
    %c0_0 = arith.constant 0 : index
    %0 = vector.load %arg1[%c0, %c0_0] : memref<8x128xbf16, #tpu.memory_space<vmem>>, vector<8x128xbf16>
    %c0_1 = arith.constant 0 : index
    %c0_2 = arith.constant 0 : index
    %1 = vector.load %arg3[%c0_1, %c0_2] : memref<128x128xbf16, #tpu.memory_space<vmem>>, vector<128x128xbf16>
    %cst = arith.constant dense<0.000000e+00> : vector<8x128xf32>
    %2 = tpu.matmul %0, %1, %cst {dimension_numbers = #tpu.dot_dimension_numbers<[1], [0], [0], [1], [0, 0, 1, 1], [], []>} : vector<8x128xbf16>, vector<128x128xbf16>, vector<8x128xf32> -> vector<8x128xf32>
    %c0_3 = arith.constant 0 : index
    %c0_4 = arith.constant 0 : index
    %3 = vector.load %arg4[%c0_3, %c0_4] : memref<1x128xf32, #tpu.memory_space<vmem>>, vector<1x128xf32>
    %4 = vector.broadcast %3 : vector<1x128xf32> to vector<8x128xf32>
    %5 = arith.addf %2, %4 : vector<8x128xf32>
    %cst_5 = arith.constant 0.000000e+00 : f32
    %6 = vector.broadcast %cst_5 : f32 to vector<8x128xf32>
    %7 = arith.maximumf %5, %6 : vector<8x128xf32>
    %8 = arith.truncf %7 : vector<8x128xf32> to vector<8x128xbf16>
    %c0_6 = arith.constant 0 : index
    %c0_7 = arith.constant 0 : index
    %9 = vector.load %arg5[%c0_6, %c0_7] : memref<128x128xbf16, #tpu.memory_space<vmem>>, vector<128x128xbf16>
    %cst_8 = arith.constant dense<0.000000e+00> : vector<8x128xf32>
    %10 = tpu.matmul %8, %9, %cst_8 {dimension_numbers = #tpu.dot_dimension_numbers<[1], [0], [0], [1], [0, 0, 1, 1], [], []>} : vector<8x128xbf16>, vector<128x128xbf16>, vector<8x128xf32> -> vector<8x128xf32>
    %c0_9 = arith.constant 0 : index
    %c0_10 = arith.constant 0 : index
    %11 = vector.load %arg6[%c0_9, %c0_10] : memref<1x128xf32, #tpu.memory_space<vmem>>, vector<1x128xf32>
    %12 = vector.broadcast %11 : vector<1x128xf32> to vector<8x128xf32>
    %13 = arith.addf %10, %12 : vector<8x128xf32>
    %cst_11 = arith.constant 0.000000e+00 : f32
    %14 = vector.broadcast %cst_11 : f32 to vector<8x128xf32>
    %15 = arith.maximumf %13, %14 : vector<8x128xf32>
    %16 = arith.truncf %15 : vector<8x128xf32> to vector<8x128xbf16>
    %c0_12 = arith.constant 0 : index
    %c0_13 = arith.constant 0 : index
    %17 = vector.load %arg7[%c0_12, %c0_13] : memref<128x256xbf16, #tpu.memory_space<vmem>>, vector<128x256xbf16>
    %cst_14 = arith.constant dense<0.000000e+00> : vector<8x256xf32>
    %18 = tpu.matmul %16, %17, %cst_14 {dimension_numbers = #tpu.dot_dimension_numbers<[1], [0], [0], [1], [0, 0, 1, 1], [], []>} : vector<8x128xbf16>, vector<128x256xbf16>, vector<8x256xf32> -> vector<8x256xf32>
    %c0_15 = arith.constant 0 : index
    %c0_16 = arith.constant 0 : index
    %19 = vector.load %arg8[%c0_15, %c0_16] : memref<1x256xf32, #tpu.memory_space<vmem>>, vector<1x256xf32>
    %20 = vector.broadcast %19 : vector<1x256xf32> to vector<8x256xf32>
    %21 = arith.addf %18, %20 : vector<8x256xf32>
    %22 = vector.extract_strided_slice %21 {offsets = [0, 0], sizes = [8, 128], strides = [1, 1]} : vector<8x256xf32> to vector<8x128xf32>
    %23 = vector.extract_strided_slice %21 {offsets = [0, 128], sizes = [8, 128], strides = [1, 1]} : vector<8x256xf32> to vector<8x128xf32>
    %24 = math.exp %23 : vector<8x128xf32>
    %c0_17 = arith.constant 0 : index
    %c0_18 = arith.constant 0 : index
    %25 = vector.load %arg9[%c0_17, %c0_18] : memref<8x128xf32, #tpu.memory_space<vmem>>, vector<8x128xf32>
    tpu.vector_store %arg9[%c0_17, %c0_18], %22 {strides = array<i32>} : memref<8x128xf32, #tpu.memory_space<vmem>>, vector<8x128xf32>,
    %c0_19 = arith.constant 0 : index
    %c0_20 = arith.constant 0 : index
    %26 = vector.load %arg10[%c0_19, %c0_20] : memref<8x128xf32, #tpu.memory_space<vmem>>, vector<8x128xf32>
    tpu.vector_store %arg10[%c0_19, %c0_20], %24 {strides = array<i32>} : memref<8x128xf32, #tpu.memory_space<vmem>>, vector<8x128xf32>,
    %c0_21 = arith.constant 0 : index
    %c0_22 = arith.constant 0 : index
    %27 = vector.load %arg2[%c0_21, %c0_22] : memref<8x128xf32, #tpu.memory_space<vmem>>, vector<8x128xf32>
    %cst_23 = arith.constant -2.000000e+00 : f32
    %28 = vector.broadcast %cst_23 : f32 to vector<8x128xf32>
    %29 = arith.mulf %28, %23 : vector<8x128xf32>
    %30 = math.exp %29 : vector<8x128xf32>
    %31 = arith.subf %27, %22 : vector<8x128xf32>
    %cst_24 = arith.constant -5.000000e-01 : f32
    %32 = vector.broadcast %cst_24 : f32 to vector<8x128xf32>
    %33 = arith.mulf %32, %31 : vector<8x128xf32>
    %34 = arith.mulf %33, %31 : vector<8x128xf32>
    %35 = arith.mulf %34, %30 : vector<8x128xf32>
    %36 = arith.subf %35, %23 : vector<8x128xf32>
    %cst_25 = arith.constant 0.918938517 : f32
    %37 = vector.broadcast %cst_25 : f32 to vector<8x128xf32>
    %38 = arith.subf %36, %37 : vector<8x128xf32>
    %cst_26 = arith.constant 1.000000e+00 : f32
    %39 = vector.broadcast %cst_26 : f32 to vector<1x128xf32>
    %cst_27 = arith.constant dense<0.000000e+00> : vector<1x8xf32>
    %40 = tpu.matmul %39, %38, %cst_27 {dimension_numbers = #tpu.dot_dimension_numbers<[1], [1], [0], [0], [0, 0, 1, 0], [], []>, precision = #tpu.contract_precision<fp32>} : vector<1x128xf32>, vector<8x128xf32>, vector<1x8xf32> -> vector<1x8xf32>
    %c0_28 = arith.constant 0 : index
    %c0_29 = arith.constant 0 : index
    %41 = vector.load %arg11[%c0_28, %c0_29] : memref<1x8xf32, #tpu.memory_space<vmem>>, vector<1x8xf32>
    tpu.vector_store %arg11[%c0_28, %c0_29], %40 {strides = array<i32>} : memref<1x8xf32, #tpu.memory_space<vmem>>, vector<1x8xf32>,
    return
  }
  func.func @transform_0(%arg0: i32) -> (i32, i32) {
    %c0_i32 = arith.constant 0 : i32
    %c0_i32_0 = arith.constant 0 : i32
    return %arg0, %c0_i32 : i32, i32
  }
  func.func @transform_1(%arg0: i32) -> (i32, i32) {
    %c0_i32 = arith.constant 0 : i32
    %c0_i32_0 = arith.constant 0 : i32
    return %arg0, %c0_i32 : i32, i32
  }
  func.func @transform_2(%arg0: i32) -> (i32, i32) {
    %c0_i32 = arith.constant 0 : i32
    %c0_i32_0 = arith.constant 0 : i32
    %c0_i32_1 = arith.constant 0 : i32
    return %c0_i32, %c0_i32_0 : i32, i32
  }
  func.func @transform_3(%arg0: i32) -> (i32, i32) {
    %c0_i32 = arith.constant 0 : i32
    %c0_i32_0 = arith.constant 0 : i32
    %c0_i32_1 = arith.constant 0 : i32
    return %c0_i32, %c0_i32_0 : i32, i32
  }
  func.func @transform_4(%arg0: i32) -> (i32, i32) {
    %c0_i32 = arith.constant 0 : i32
    %c0_i32_0 = arith.constant 0 : i32
    %c0_i32_1 = arith.constant 0 : i32
    return %c0_i32, %c0_i32_0 : i32, i32
  }
  func.func @transform_5(%arg0: i32) -> (i32, i32) {
    %c0_i32 = arith.constant 0 : i32
    %c0_i32_0 = arith.constant 0 : i32
    %c0_i32_1 = arith.constant 0 : i32
    return %c0_i32, %c0_i32_0 : i32, i32
  }
  func.func @transform_6(%arg0: i32) -> (i32, i32) {
    %c0_i32 = arith.constant 0 : i32
    %c0_i32_0 = arith.constant 0 : i32
    %c0_i32_1 = arith.constant 0 : i32
    return %c0_i32, %c0_i32_0 : i32, i32
  }
  func.func @transform_7(%arg0: i32) -> (i32, i32) {
    %c0_i32 = arith.constant 0 : i32
    %c0_i32_0 = arith.constant 0 : i32
    %c0_i32_1 = arith.constant 0 : i32
    return %c0_i32, %c0_i32_0 : i32, i32
  }
  func.func @transform_8(%arg0: i32) -> (i32, i32) {
    %c0_i32 = arith.constant 0 : i32
    %c0_i32_0 = arith.constant 0 : i32
    return %arg0, %c0_i32 : i32, i32
  }
  func.func @transform_9(%arg0: i32) -> (i32, i32) {
    %c0_i32 = arith.constant 0 : i32
    %c0_i32_0 = arith.constant 0 : i32
    return %arg0, %c0_i32 : i32, i32
  }
  func.func @transform_10(%arg0: i32) -> (i32, i32) {
    %c0_i32 = arith.constant 0 : i32
    %c0_i32_0 = arith.constant 0 : i32
    return %c0_i32, %arg0 : i32, i32
  }
}

</mosaic_0001>

<bundles_post_ra>
// kernel: stochastic_actor_forward.1
= control target key start
LH: loop header
LB: loop body
LE: loop exit
PB: predicated region body
PF: predicated region fallthrough
CT: control target
= control target key end

     0   :  { %16 = vsyncpa [#allocation3], 0  ;;  %s907_s0 = inlined_call_operand.vmem [shape: bf16[8,128], index: 0, kind: input, shape index: {}]   ;;  %s908_s1 = inlined_call_operand.vmem [shape: f32[8,128], index: 1, kind: input, shape index: {}]   ;;  %s909_s2 = inlined_call_operand.vmem [shape: bf16[128,128], index: 2, kind: input, shape index: {}]   ;;  %s910_s3 = inlined_call_operand.vmem [shape: f32[1,128], index: 3, kind: input, shape index: {}]   ;;  %s911_s4 = inlined_call_operand.hbm [shape: bf16[128,128], index: 4, kind: input, shape index: {}]   ;;  %s912_s5 = inlined_call_operand.vmem [shape: f32[1,128], index: 5, kind: input, shape index: {}]   ;;  %s913_s6 = inlined_call_operand.hbm [shape: bf16[128,256], index: 6, kind: input, shape index: {}]   ;;  %s914_s7 = inlined_call_operand.vmem [shape: f32[1,256], index: 7, kind: input, shape index: {}]   ;;  %s915_s8 = inlined_call_operand.vmem [shape: f32[8,128], index: 8, kind: output, shape index: {0}]   ;;  %s916_s9 = inlined_call_operand.vmem [shape: f32[8,128], index: 9, kind: output, shape index: {1}]   ;;  %s917_s10 = inlined_call_operand.hbm [shape: f32[1,8], index: 10, kind: output, shape index: {2}]  }
   0x1   :  { %17 = vsyncpa [#allocation6], 0 }
   0x2   :  { %18 = vsyncpa [#allocation4], 0  ;;  %s31_s15 = sshll.u32 %s911_s4, 4  ;;  %s789_s16 = smov [#allocation2]   ;;  %s32_s15 = int_to_ptr.hbm [resolvable:$true] %s31_s15 }
   0x3   :  { %s33_s17 = sshll.u32 %s789_s16, 4  ;;  %s46_s20 = sshll.u32 %s913_s6, 4  ;;  %s34_s17 = int_to_ptr.vmem [resolvable:$true] %s33_s17  ;;  %s47_s20 = int_to_ptr.hbm [resolvable:$true] %s46_s20 }
   0x4   :  { %s790_s21 = smov 64   ;;  %s791_s22 = smov 4  }
   0x5   :  { %39 = dma.hbm_to_vmem [thread:$0]  %s32_s15, 1024, %s34_s17, [#allocation3], %s790_s21, %s790_s21, %s791_s22  }
   0x6   :  { %s792_s23 = smov [#allocation5]   ;;  %s793_s25 = smov 128  }
   0x7   :  { %s48_s24 = sshll.u32 %s792_s23, 4  ;;  %s794_s26 = smov 8   ;;  %s49_s24 = int_to_ptr.vmem [resolvable:$true] %s48_s24 }
   0x8   :  { %54 = dma.hbm_to_vmem [thread:$0]  %s47_s20, 2048, %s49_s24, [#allocation6], %s793_s25, %s793_s25, %s794_s26  }
   0x9   :  { %783 = dma.done.wait [#allocation3], 1024  }
   0xa   :  { %784 = vsyncadd [#allocation3], 4294966272 }
   0xb   :  { %785 = dma.done.wait [#allocation6], 2048  }
   0xc   :  { %786 = vsyncadd [#allocation6], 4294965248  ;;  %v671_v0 = vld [vmem:[%s909_s2 + $0x38] sm:$0xff]  ;;  %v670_v1 = vld [vmem:[%s909_s2 + $0x30] sm:$0xff]  ;;  %s520_s29 = sshll.u32 %s917_s10, 4  ;;  %vm507_vm0 = vcmask 57344   ;;  %s521_s29 = int_to_ptr.hbm [resolvable:$true] %s520_s29 }
   0xd   :  { %134 = vmatpush.bf16.msra.mxu0 %v671_v0  ;;  %v679_v2 = vld [vmem:[#allocation2 + $0x38] sm:$0xff]  ;;  %v678_v3 = vld [vmem:[#allocation2 + $0x30] sm:$0xff]  ;;  %v669_v4 = vld [vmem:[%s909_s2 + $0x28] sm:$0xff] }
   0xe   :  { %217 = vmatpush.bf16.msra.mxu1 %v679_v2  ;;  %v677_v5 = vld [vmem:[#allocation2 + $0x28] sm:$0xff]  ;;  %v668_v6 = vld [vmem:[%s909_s2 + $0x20] sm:$0xff]  ;;  %v667_v8 = vld [vmem:[%s909_s2 + $0x18] sm:$0xff] }
   0xf   :  { %v676_v7 = vld [vmem:[#allocation2 + $0x20] sm:$0xff]  ;;  %v675_v9 = vld [vmem:[#allocation2 + $0x18] sm:$0xff]  ;;  %v666_v10 = vld [vmem:[%s909_s2 + $0x10] sm:$0xff] }
  0x10   :  { %v674_v11 = vld [vmem:[#allocation2 + $0x10] sm:$0xff]  ;;  %v665_v12 = vld [vmem:[%s909_s2 + $0x8] sm:$0xff]  ;;  %v664_v13 = vld [vmem:[%s909_s2] sm:$0xff] }
  0x11   :  { %135 = vmatpush.bf16.msra.mxu0 %v670_v1  ;;  %v65_v14 = vld [vmem:[%s907_s0] sm:$0xf]  ;;  %v673_v15 = vld [vmem:[#allocation2 + $0x8] sm:$0xff]  ;;  %v657_v17 = vld [vmem:[#allocation5 + $0x70] sm:$0xf] }
  0x12   :  { %218 = vmatpush.bf16.msra.mxu1 %v678_v3  ;;  %v672_v16 = vld [vmem:[#allocation2] sm:$0xff]  ;;  %v695_v18 = vld [vmem:[#allocation5 + $0x74] sm:$0xf0]  ;;  %v694_v19 = vld [vmem:[#allocation5 + $0x74] sm:$0xf] }
  0x13   :  { %v658_v20 = vor.u32 %v695_v18, %v657_v17  ;;  %v659_v21 = vld [vmem:[#allocation5 + $0x78] sm:$0xf0]  ;;  %v649_v22 = vld [vmem:[#allocation5 + $0x60] sm:$0xf]  ;;  %v693_v23 = vld [vmem:[#allocation5 + $0x64] sm:$0xf0] }
  0x14   :  { %v662_v24 = vor.u32 %v694_v19, %v659_v21  ;;  %v692_v25 = vld [vmem:[#allocation5 + $0x64] sm:$0xf]  ;;  %v651_v26 = vld [vmem:[#allocation5 + $0x68] sm:$0xf0]  ;;  %v650_v27 = vor.u32 %v693_v23, %v649_v22  ;;  %v641_v29 = vld [vmem:[#allocation5 + $0x50] sm:$0xf] }
  0x15   :  { %136 = vmatpush.bf16.msra.mxu0 %v669_v4  ;;  %334 = vmatpush.bf16.msra.mxu2 %v658_v20  ;;  %v654_v28 = vor.u32 %v692_v25, %v651_v26  ;;  %v691_v30 = vld [vmem:[#allocation5 + $0x54] sm:$0xf0]  ;;  %v690_v31 = vld [vmem:[#allocation5 + $0x54] sm:$0xf]  ;;  %v643_v32 = vld [vmem:[#allocation5 + $0x58] sm:$0xf0] }
  0x16   :  { %219 = vmatpush.bf16.msra.mxu1 %v677_v5  ;;  %347 = vmatpush.bf16.msra.mxu3 %v662_v24  ;;  %v642_v33 = vor.u32 %v691_v30, %v641_v29  ;;  %v646_v34 = vor.u32 %v690_v31, %v643_v32  ;;  %v633_v35 = vld [vmem:[#allocation5 + $0x40] sm:$0xf]  ;;  %v689_v36 = vld [vmem:[#allocation5 + $0x44] sm:$0xf0]  ;;  %v688_v37 = vld [vmem:[#allocation5 + $0x44] sm:$0xf] }
  0x17   :  { %v635_v38 = vld [vmem:[#allocation5 + $0x48] sm:$0xf0]  ;;  %v634_v39 = vor.u32 %v689_v36, %v633_v35  ;;  %v625_v41 = vld [vmem:[#allocation5 + $0x30] sm:$0xf]  ;;  %v687_v42 = vld [vmem:[#allocation5 + $0x34] sm:$0xf0] }
  0x18   :  { %v638_v40 = vor.u32 %v688_v37, %v635_v38  ;;  %v686_v43 = vld [vmem:[#allocation5 + $0x34] sm:$0xf]  ;;  %v627_v44 = vld [vmem:[#allocation5 + $0x38] sm:$0xf0]  ;;  %v626_v45 = vor.u32 %v687_v42, %v625_v41  ;;  %v617_v47 = vld [vmem:[#allocation5 + $0x20] sm:$0xf] }
  0x19   :  { %137 = vmatpush.bf16.msra.mxu0 %v668_v6  ;;  %335 = vmatpush.bf16.msra.mxu2 %v650_v27  ;;  %v630_v46 = vor.u32 %v686_v43, %v627_v44  ;;  %v685_v48 = vld [vmem:[#allocation5 + $0x24] sm:$0xf0]  ;;  %v684_v49 = vld [vmem:[#allocation5 + $0x24] sm:$0xf]  ;;  %v619_v50 = vld [vmem:[#allocation5 + $0x28] sm:$0xf0] }
  0x1a   :  { %220 = vmatpush.bf16.msra.mxu1 %v676_v7  ;;  %348 = vmatpush.bf16.msra.mxu3 %v654_v28  ;;  %v618_v51 = vor.u32 %v685_v48, %v617_v47  ;;  %v622_v52 = vor.u32 %v684_v49, %v619_v50  ;;  %v705_v53 = vld [vmem:[%s910_s3] ss:$0 sm:$0xff]  ;;  %v609_v59 = vld [vmem:[#allocation5 + $0x10] sm:$0xf]  ;;  %v683_v60 = vld [vmem:[#allocation5 + $0x14] sm:$0xf0] }
  0x1b   :  { %v682_v61 = vld [vmem:[#allocation5 + $0x14] sm:$0xf]  ;;  %v610_v62 = vor.u32 %v683_v60, %v609_v59  ;;  %v611_v63 = vld [vmem:[#allocation5 + $0x18] sm:$0xf0]  ;;  %v601_v1 = vld [vmem:[#allocation5] sm:$0xf] }
  0x1c   :  { %v614_v0 = vor.u32 %v682_v61, %v611_v63  ;;  %v681_v2 = vld [vmem:[#allocation5 + $0x4] sm:$0xf0]  ;;  %v680_v3 = vld [vmem:[#allocation5 + $0x4] sm:$0xf]  ;;  %v603_v5 = vld [vmem:[#allocation5 + $0x8] sm:$0xf0] }
  0x1d   :  { %138 = vmatpush.bf16.msra.mxu0 %v667_v8  ;;  %336 = vmatpush.bf16.msra.mxu2 %v642_v33  ;;  %v602_v4 = vor.u32 %v681_v2, %v601_v1  ;;  %v606_v6 = vor.u32 %v680_v3, %v603_v5  ;;  %v706_v7 = vld [vmem:[%s912_s5] ss:$0 sm:$0xff]  ;;  %v795_v37 = vmov 0.0  }
  0x1e   :  { %221 = vmatpush.bf16.msra.mxu1 %v675_v9  ;;  %349 = vmatpush.bf16.msra.mxu3 %v646_v34  ;;  %v364_v19 = vld [vmem:[%s908_s1] sm:$0xff]  ;;  %s797_s1 = smov [#allocation7]  }
  0x21   :  { %139 = vmatpush.bf16.msra.mxu0 %v666_v10  ;;  %337 = vmatpush.bf16.msra.mxu2 %v634_v39 }
  0x22   :  { %222 = vmatpush.bf16.msra.mxu1 %v674_v11  ;;  %350 = vmatpush.bf16.msra.mxu3 %v638_v40  ;;  %v796_v40 = vmov 1.0  }
  0x25   :  { %140 = vmatpush.bf16.msra.mxu0 %v665_v12  ;;  %338 = vmatpush.bf16.msra.mxu2 %v626_v45 }
  0x26   :  { %223 = vmatpush.bf16.msra.mxu1 %v673_v15  ;;  %351 = vmatpush.bf16.msra.mxu3 %v630_v46 }
  0x29   :  { %141 = vmatpush.bf16.msra.mxu0 %v664_v13  ;;  %339 = vmatpush.bf16.msra.mxu2 %v618_v51  ;;  %v248_v13 = vld [vmem:[%s914_s7] sm:$0x3] }
  0x2a   :  { %224 = vmatpush.bf16.msra.mxu1 %v672_v16  ;;  %352 = vmatpush.bf16.msra.mxu3 %v622_v52  ;;  %v251_v15 = vperm.slane %v248_v13, 1 }
  0x2c   :  { %142 = vmatmul.bf16.vlgmr.msra.gmra.mxu0 %v65_v14  ;;  %v250_v14 = vperm.slane %v248_v13, 0 }
  0x2d   :  { %340 = vmatpush.bf16.msra.mxu2 %v610_v62 }
  0x2e   :  { %353 = vmatpush.bf16.msra.mxu3 %v614_v0 }
  0x31   :  { %341 = vmatpush.bf16.msra.mxu2 %v602_v4 }
  0x32   :  { %354 = vmatpush.bf16.msra.mxu3 %v606_v6 }
  0xa9   :  { %v143_v54 = vpop.f32.mrf.mxu0 }
  0xaa   :  { %v144_v55 = vadd.f32 %v705_v53, %v143_v54 }
  0xac   :  { %v147_v56 = vmax.f32 %v144_v55, 0.0 }
  0xae   :  { %v148_v57 = vpack.c.bf16 %v147_v56, %v147_v56 }
  0xb0   :  { %225 = vmatmul.bf16.vlgmr.msra.gmra.mxu1 %v148_v57 }
  0xb1   :  { %v145_v58 = vpop.f32.mrf.mxu0 }
 0x12d   :  { %v226_v8 = vpop.f32.mrf.mxu1 }
 0x12e   :  { %v227_v9 = vadd.f32 %v706_v7, %v226_v8 }
 0x130   :  { %v230_v10 = vmax.f32 %v227_v9, 0.0 }
 0x132   :  { %v231_v11 = vpack.c.bf16 %v230_v10, %v230_v10 }
 0x134   :  { %342 = vmatmul.bf16.vlgmr.msra.gmra.mxu2 %v231_v11  ;;  %355 = vmatmul.bf16.vlgmr.msra.gmra.mxu3 %v231_v11 }
 0x135   :  { %v228_v12 = vpop.f32.mrf.mxu1 }
 0x1b7   :  { %v343_v16 = vpop.f32.mrf.mxu2  ;;  %v356_v17 = vpop.f32.mrf.mxu3 }
 0x1b8   :  { %v344_v18 = vadd.f32 %v343_v16, %v250_v14  ;;  %v357_v20 = vadd.f32 %v356_v17, %v251_v15 }
 0x1ba   :  { %362 = vst [vmem:[%s915_s8] sm:$0xff] %v344_v18  ;;  %v360_v21 = vmul.f32 1.442695, %v357_v20  ;;  %v365_v22 = vmul.f32 -2.0, %v357_v20  ;;  %v368_v23 = vsub.f32 %v364_v19, %v344_v18  ;;  %s518_s8 = sshll.u32 %s797_s1, 4  ;;  %s519_s8 = int_to_ptr.vmem [resolvable:$true] %s518_s8 }
 0x1bc   :  { %707 = vpow2.f32 %v360_v21  ;;  %v366_v24 = vmul.f32 1.442695, %v365_v22  ;;  %v369_v25 = vmul.f32 -0.5, %v368_v23 }
 0x1be   :  { %709 = vpow2.f32 %v366_v24  ;;  %v370_v29 = vmul.f32 %v369_v25, %v368_v23 }
 0x1bf   :  { %v345_v26 = vpop.f32.mrf.mxu2  ;;  %v358_v27 = vpop.f32.mrf.mxu3 }
 0x1c2   :  { %v708_v28 = vpop.eup %707 }
 0x1c3   :  { %363 = vst [vmem:[%s916_s9] sm:$0xff] %v708_v28 }
 0x1c4   :  { %v710_v30 = vpop.eup %709 }
 0x1c5   :  { %v371_v31 = vmul.f32 %v710_v30, %v370_v29 }
 0x1c7   :  { %v372_v32 = vsub.f32 %v371_v31, %v357_v20 }
 0x1c9   :  { %v663_v33 = vadd.f32 -0.9189385, %v372_v32 }
 0x1cb   :  { %v389_v34 = vand.u32 4294901760, %v663_v33 }
 0x1cd   :  { %390 = vmatpush.xpose.msrb.mxu0 %v389_v34  ;;  %458 = vmatpush.xpose.msrb.mxu3 %v389_v34  ;;  %v411_v35 = vsub.f32 %v663_v33, %v389_v34 }
 0x1cf   :  { %437 = vmatpush.xpose.msrb.mxu2 %v411_v35  ;;  %v412_v36 = vand.u32 4294901760, %v411_v35 }
 0x1d0   :  { %391 = vmatmul.f32.vlgmr.msrb.gmra.mxu0 %v795_v37  ;;  %459 = vmatmul.f32.vlgmr.msrb.gmra.mxu3 %v795_v37 }
 0x1d1   :  { %481 = vmatpush.xpose.msra.mxu0 %v412_v36  ;;  %v413_v38 = vsub.f32 %v411_v35, %v412_v36 }
 0x1d2   :  { %438 = vmatmul.f32.vlgmr.msrb.gmra.mxu2 %v795_v37 }
 0x1d3   :  { %v414_v39 = vand.u32 4294901760, %v413_v38 }
 0x1d5   :  { %415 = vmatpush.xpose.msrb.mxu1 %v414_v39 }
 0x1d8   :  { %416 = vmatmul.f32.vlgmr.msrb.gmra.mxu1 %v796_v40  ;;  %482 = vmatmul.f32.vlgmr.msra.gmra.mxu0 %v796_v40 }
 0x1d9   :  { %502 = vmatpush.xpose.msra.mxu1 %v389_v34 }
 0x1e0   :  { %503 = vmatmul.f32.vlgmr.msra.gmra.mxu1 %v796_v40 }
 0x24d   :  { %v392_v41 = vpop.f32.mrf.mxu0 }
 0x253   :  { %v460_v45 = vpop.f32.mrf.mxu3 }
 0x255   :  { %v417_v42 = vpop.f32.mrf.mxu1  ;;  %v439_v43 = vpop.f32.mrf.mxu2 }
 0x256   :  { %v418_v44 = vadd.f32 %v417_v42, %v392_v41  ;;  %v483_v47 = vpop.f32.mrf.mxu0 }
 0x258   :  { %v440_v46 = vadd.f32 %v439_v43, %v418_v44 }
 0x25a   :  { %v461_v48 = vadd.f32 %v460_v45, %v440_v46 }
 0x25c   :  { %v484_v49 = vadd.f32 %v483_v47, %v461_v48 }
 0x25d   :  { %v504_v50 = vpop.f32.mrf.mxu1 }
 0x25e   :  { %v505_v51 = vadd.f32 %v504_v50, %v484_v49 }
 0x260   :  { %508 = vst.msk [vmem:[#allocation7] sm:$0x1] %vm507_vm0, %v505_v51 }
 0x261   :  { %523 = dma.vmem_to_hbm [thread:$0]  %s519_s8, 16, %s521_s29, [#allocation4]  }
 0x262   :  { %787 = dma.done.wait [#allocation4], 16  }
 0x263   :  { %788 = vsyncadd [#allocation4], 4294967280 }
 0x264   :  { %532 = vsyncpa [#allocation3], 1 }
 0x265   :  { %533 = vsyncpa [#allocation6], 1 }
 0x266   :  { %534 = vsyncpa [#allocation4], 1 }

</bundles_post_ra>
